<compile_context>
chip_gen: v7x
topology: tpu7x:2x2x1
jax: 0.10.0
libtpu: 0.0.40
codegen_flags: <defaults>
</compile_context>

<pallas_src>
import jax
import jax.numpy as jnp
from jax.experimental import pallas as pl
from jax.experimental.pallas import tpu as pltpu  # noqa: F401  (no TPU-specific params needed at this size)

# ---------------- model hyper-parameters (small, consistent with the module) -------
B = 2          # batch
S = 8          # word_pad_len (sequence length)
D = 32         # d_model
H = 64         # hidden_size of position-wise FFN
N_HEADS = 4
D_K = D // N_HEADS
SCALE = float(D_K) ** 0.5
LN_EPS = 1e-5
NEG_FILL = -1000000000.0


def _layernorm(x, gamma, beta):
    # PyTorch nn.LayerNorm over the last dim, biased variance, eps=1e-5
    mu = jnp.mean(x, axis=-1, keepdims=True)
    var = jnp.mean((x - mu) ** 2, axis=-1, keepdims=True)
    return (x - mu) * jax.lax.rsqrt(var + LN_EPS) * gamma + beta


def encoder_layer_kernel(
    x_ref, mask_ref,
    wqkv_ref, bqkv_ref, wo_ref, bo_ref, g1_ref, be1_ref,
    w1_ref, b1_ref, w2_ref, b2_ref, g2_ref, be2_ref,
    out_ref, att_ref,
):
    # ---- flatten batch for all position-wise work -------------------------
    xf = x_ref[...].reshape(B * S, D)                     # (16, 32)

    # ---- hoisted additive mask (computed ONCE, reused by all heads) --------
    neg = jnp.where(mask_ref[...] == 0.0, jnp.float32(NEG_FILL), jnp.float32(0.0))  # (B,1,S)
    neg_all = jnp.concatenate([neg] * N_HEADS, axis=0)    # (H*B, 1, S), broadcasts over query rows

    # ---- fused QKV projection (single MXU matmul) --------------------------
    qkv = jnp.dot(xf, wqkv_ref[...], preferred_element_type=jnp.float32) + bqkv_ref[...]
    q = qkv[:, 0:D] * jnp.float32(1.0 / SCALE)            # scale q once, full width
    k = qkv[:, D:2 * D]
    v = qkv[:, 2 * D:3 * D]

    # ---- per-head score matmuls, sublane-stacked for one batched softmax ---
    score_parts = []
    v_parts = []
    for h in range(N_HEADS):                              # static unrolled loop, B batched inside
        sl = slice(h * D_K, (h + 1) * D_K)
        qh = q[:, sl].reshape(B, S, D_K)                  # (2, 8, 8)
        kh = k[:, sl].reshape(B, S, D_K)
        v_parts.append(v[:, sl].reshape(B, S, D_K))
        score_parts.append(
            jnp.einsum('bqd,bkd->bqk', qh, kh, preferred_element_type=jnp.float32))  # (B,S,S)

    scores = jnp.concatenate(score_parts, axis=0)         # (H*B, S, S) = (8, 8, 8)

    # ---- single masked softmax for ALL heads (1x max/exp/sum/reciprocal) ---
    scores = scores + neg_all
    scores = scores - jnp.max(scores, axis=-1, keepdims=True)
    e = jnp.exp(scores)
    denom = jnp.sum(e, axis=-1, keepdims=True)
    att = e * pl.reciprocal(denom, approx=False)          # exact recip on EUP (keeps tolerance)

    # single store in kernel-natural (head-major) layout; wrapper transposes.
    att_ref[...] = att.reshape(N_HEADS, B, S, S)

    # ---- per-head context matmuls, lane-concat -> ONE output projection ----
    ctx_parts = []
    for h in range(N_HEADS):
        att_h = att[h * B:(h + 1) * B]                    # (B, S, S) sublane slice
        ctx_h = jnp.einsum('bqk,bkd->bqd', att_h, v_parts[h],
                           preferred_element_type=jnp.float32)       # (B, S, D_K)
        ctx_parts.append(ctx_h.reshape(B * S, D_K))
    ctx = jnp.concatenate(ctx_parts, axis=-1)             # (16, 32): lanes h0|h1|h2|h3

    attn = xf + bo_ref[...] + jnp.dot(ctx, wo_ref[...], preferred_element_type=jnp.float32)

    # ---- residual + layernorm 1 (dropout = identity, eval mode) ------------
    attn_out = _layernorm(attn, g1_ref[...], be1_ref[...])            # (16, 32)

    # ---- position-wise feed forward (flattened) -----------------------------
    hdn = jnp.dot(attn_out, w1_ref[...], preferred_element_type=jnp.float32) + b1_ref[...]
    hdn = jnp.maximum(hdn, 0.0)
    ffn = jnp.dot(hdn, w2_ref[...], preferred_element_type=jnp.float32) + b2_ref[...]
    ffn = ffn + attn_out                                   # residual (dropout = identity)
    out_ref[...] = _layernorm(ffn, g2_ref[...], be2_ref[...]).reshape(B, S, D)


@jax.jit
def encoder_layer(x, mask, params):
    """x: (B, S, D) f32; mask: (B, 1, S) f32 (nonzero = keep). Returns (out, att)."""
    (wq, bq, wk, bk, wv, bv, wo, bo, g1, be1, w1, b1, w2, b2, g2, be2) = params

    # One-time weight packing: fuse Q/K/V projections into a single (D, 3D) matmul.
    wqkv = jnp.concatenate([wq, wk, wv], axis=1)   # (D, 3D)
    bqkv = jnp.concatenate([bq, bk, bv], axis=1)   # (1, 3D)

    out, att_hb = pl.pallas_call(
        encoder_layer_kernel,
        out_shape=(
            jax.ShapeDtypeStruct((B, S, D), jnp.float32),
            jax.ShapeDtypeStruct((N_HEADS, B, S, S), jnp.float32),  # kernel-natural layout
        ),
        # No grid: a single invocation; total working set (~60 KB) lives in VMEM.
    )(x, mask, wqkv, bqkv, wo, bo, g1, be1, w1, b1, w2, b2, g2, be2)

    # Wrapper-side layout plumbing (XLA transpose, not in-kernel relayout).
    att = jnp.transpose(att_hb, (1, 0, 2, 3))       # (B, N_HEADS, S, S)
    return out, att


# ---------------- pure-JAX reference (for correctness check) ----------------------
def encoder_layer_ref(x, mask, params):
    (wq, bq, wk, bk, wv, bv, wo, bo, g1, be1, w1, b1, w2, b2, g2, be2) = params
    q = x @ wq + bq
    k = x @ wk + bk
    v = x @ wv + bv
    qh = q.reshape(B, S, N_HEADS, D_K).transpose(0, 2, 1, 3)
    kh = k.reshape(B, S, N_HEADS, D_K).transpose(0, 2, 1, 3)
    vh = v.reshape(B, S, N_HEADS, D_K).transpose(0, 2, 1, 3)
    scores = jnp.einsum("bhqd,bhkd->bhqk", qh / SCALE, kh)
    scores = jnp.where(mask[:, None, :, :] == 0.0, NEG_FILL, scores)
    att = jax.nn.softmax(scores, axis=-1)
    ctx = jnp.einsum("bhqk,bhkd->bhqd", att, vh).transpose(0, 2, 1, 3).reshape(B, S, D)
    attn_out = _layernorm(ctx @ wo + bo + x, g1, be1)
    ffn = jax.nn.relu(attn_out @ w1 + b1) @ w2 + b2
    return _layernorm(ffn + attn_out, g2, be2), att


if __name__ == "__main__":
    key = jax.random.PRNGKey(0)
    ks = jax.random.split(key, 10)

    x = jax.random.normal(ks[0], (B, S, D), dtype=jnp.float32)
    # padding mask: last 2 positions of batch element 1 are padded
    mask = jnp.ones((B, 1, S), dtype=jnp.float32)
    mask = mask.at[1, 0, S - 2:].set(0.0)

    init = lambda k, shape: (jax.random.normal(k, shape, dtype=jnp.float32) * 0.05)
    params = (
        init(ks[1], (D, D)), init(ks[2], (1, D)),   # W_Q (already (in,out)), b_Q
        init(ks[3], (D, D)), init(ks[4], (1, D)),   # W_K, b_K
        init(ks[5], (D, D)), init(ks[6], (1, D)),   # W_V, b_V
        init(ks[7], (D, D)), init(ks[8], (1, D)),   # fc, b_fc
        jnp.ones((1, D), jnp.float32), jnp.zeros((1, D), jnp.float32),   # layer_norm 1
        init(ks[9], (D, H)), jnp.zeros((1, H), jnp.float32),             # W_1, b_1
        init(jax.random.fold_in(key, 99), (H, D)), jnp.zeros((1, D), jnp.float32),  # W_2, b_2
        jnp.ones((1, D), jnp.float32), jnp.zeros((1, D), jnp.float32),   # layer_norm 2
    )

    out, att = encoder_layer(x, mask, params)
    out, att = jax.block_until_ready(out), jax.block_until_ready(att)

    out_ref, att_ref = encoder_layer_ref(x, mask, params)
    assert jnp.allclose(out, out_ref, atol=1e-4, rtol=1e-4), "output mismatch"
    assert jnp.allclose(att, att_ref, atol=1e-5, rtol=1e-4), "attention mismatch"

    print("KERNEL_OK")
</pallas_src>

<mosaic_0001>
module attributes {stable_mosaic.version = 11 : i64} {
  func.func @encoder_layer_kernel(%arg0: memref<2x8x32xf32, #tpu.memory_space<vmem>>, %arg1: memref<2x1x8xf32, #tpu.memory_space<vmem>>, %arg2: memref<32x96xf32, #tpu.memory_space<vmem>>, %arg3: memref<1x96xf32, #tpu.memory_space<vmem>>, %arg4: memref<32x32xf32, #tpu.memory_space<vmem>>, %arg5: memref<1x32xf32, #tpu.memory_space<vmem>>, %arg6: memref<1x32xf32, #tpu.memory_space<vmem>>, %arg7: memref<1x32xf32, #tpu.memory_space<vmem>>, %arg8: memref<32x64xf32, #tpu.memory_space<vmem>>, %arg9: memref<1x64xf32, #tpu.memory_space<vmem>>, %arg10: memref<64x32xf32, #tpu.memory_space<vmem>>, %arg11: memref<1x32xf32, #tpu.memory_space<vmem>>, %arg12: memref<1x32xf32, #tpu.memory_space<vmem>>, %arg13: memref<1x32xf32, #tpu.memory_space<vmem>>, %arg14: memref<2x8x32xf32, #tpu.memory_space<vmem>>, %arg15: memref<4x2x8x8xf32, #tpu.memory_space<vmem>>) attributes {dimension_semantics = [], scalar_prefetch = 0 : i64, scratch_operands = 0 : i64, tpu.core_type = #tpu.core_type<tc>} {
    %c0 = arith.constant 0 : index
    %c0_0 = arith.constant 0 : index
    %c0_1 = arith.constant 0 : index
    %0 = vector.load %arg0[%c0, %c0_0, %c0_1] : memref<2x8x32xf32, #tpu.memory_space<vmem>>, vector<2x8x32xf32>
    %1 = vector.shape_cast %0 : vector<2x8x32xf32> to vector<16x32xf32>
    %c0_2 = arith.constant 0 : index
    %c0_3 = arith.constant 0 : index
    %c0_4 = arith.constant 0 : index
    %2 = vector.load %arg1[%c0_2, %c0_3, %c0_4] : memref<2x1x8xf32, #tpu.memory_space<vmem>>, vector<2x1x8xf32>
    %cst = arith.constant 0.000000e+00 : f32
    %3 = vector.broadcast %cst : f32 to vector<2x1x8xf32>
    %4 = arith.cmpf oeq, %2, %3 : vector<2x1x8xf32>
    %cst_5 = arith.constant -1.000000e+09 : f32
    %cst_6 = arith.constant 0.000000e+00 : f32
    %5 = vector.broadcast %cst_5 : f32 to vector<2x1x8xf32>
    %6 = vector.broadcast %cst_6 : f32 to vector<2x1x8xf32>
    %7 = arith.select %4, %5, %6 : vector<2x1x8xi1>, vector<2x1x8xf32>
    %8 = tpu.concatenate %7, %7, %7, %7 in 0 : vector<2x1x8xf32>, vector<2x1x8xf32>, vector<2x1x8xf32>, vector<2x1x8xf32> -> vector<8x1x8xf32>
    %c0_7 = arith.constant 0 : index
    %c0_8 = arith.constant 0 : index
    %9 = vector.load %arg2[%c0_7, %c0_8] : memref<32x96xf32, #tpu.memory_space<vmem>>, vector<32x96xf32>
    %cst_9 = arith.constant dense<0.000000e+00> : vector<16x96xf32>
    %10 = tpu.matmul %1, %9, %cst_9 {dimension_numbers = #tpu.dot_dimension_numbers<[1], [0], [0], [1], [0, 0, 1, 1], [], []>} : vector<16x32xf32>, vector<32x96xf32>, vector<16x96xf32> -> vector<16x96xf32>
    %c0_10 = arith.constant 0 : index
    %c0_11 = arith.constant 0 : index
    %11 = vector.load %arg3[%c0_10, %c0_11] : memref<1x96xf32, #tpu.memory_space<vmem>>, vector<1x96xf32>
    %12 = vector.broadcast %11 : vector<1x96xf32> to vector<16x96xf32>
    %13 = arith.addf %10, %12 : vector<16x96xf32>
    %14 = vector.extract_strided_slice %13 {offsets = [0, 0], sizes = [16, 32], strides = [1, 1]} : vector<16x96xf32> to vector<16x32xf32>
    %cst_12 = arith.constant 0.353553385 : f32
    %15 = vector.broadcast %cst_12 : f32 to vector<16x32xf32>
    %16 = arith.mulf %14, %15 : vector<16x32xf32>
    %17 = vector.extract_strided_slice %13 {offsets = [0, 32], sizes = [16, 32], strides = [1, 1]} : vector<16x96xf32> to vector<16x32xf32>
    %18 = vector.extract_strided_slice %13 {offsets = [0, 64], sizes = [16, 32], strides = [1, 1]} : vector<16x96xf32> to vector<16x32xf32>
    %19 = vector.extract_strided_slice %16 {offsets = [0, 0], sizes = [16, 8], strides = [1, 1]} : vector<16x32xf32> to vector<16x8xf32>
    %20 = vector.shape_cast %19 : vector<16x8xf32> to vector<2x8x8xf32>
    %21 = vector.extract_strided_slice %17 {offsets = [0, 0], sizes = [16, 8], strides = [1, 1]} : vector<16x32xf32> to vector<16x8xf32>
    %22 = vector.shape_cast %21 : vector<16x8xf32> to vector<2x8x8xf32>
    %23 = vector.extract_strided_slice %18 {offsets = [0, 0], sizes = [16, 8], strides = [1, 1]} : vector<16x32xf32> to vector<16x8xf32>
    %24 = vector.shape_cast %23 : vector<16x8xf32> to vector<2x8x8xf32>
    "tpu.trace_start"() <{level = 10 : i32, message = "bqd,bkd->bqk"}> : () -> ()
    %cst_13 = arith.constant dense<0.000000e+00> : vector<2x8x8xf32>
    %25 = tpu.matmul %20, %22, %cst_13 {dimension_numbers = #tpu.dot_dimension_numbers<[2], [2], [1], [1], [0, 0, 0, 1, 1, 1], [0], [0]>} : vector<2x8x8xf32>, vector<2x8x8xf32>, vector<2x8x8xf32> -> vector<2x8x8xf32>
    "tpu.trace_stop"() : () -> ()
    %26 = vector.extract_strided_slice %16 {offsets = [0, 8], sizes = [16, 8], strides = [1, 1]} : vector<16x32xf32> to vector<16x8xf32>
    %27 = vector.shape_cast %26 : vector<16x8xf32> to vector<2x8x8xf32>
    %28 = vector.extract_strided_slice %17 {offsets = [0, 8], sizes = [16, 8], strides = [1, 1]} : vector<16x32xf32> to vector<16x8xf32>
    %29 = vector.shape_cast %28 : vector<16x8xf32> to vector<2x8x8xf32>
    %30 = vector.extract_strided_slice %18 {offsets = [0, 8], sizes = [16, 8], strides = [1, 1]} : vector<16x32xf32> to vector<16x8xf32>
    %31 = vector.shape_cast %30 : vector<16x8xf32> to vector<2x8x8xf32>
    "tpu.trace_start"() <{level = 10 : i32, message = "bqd,bkd->bqk"}> : () -> ()
    %cst_14 = arith.constant dense<0.000000e+00> : vector<2x8x8xf32>
    %32 = tpu.matmul %27, %29, %cst_14 {dimension_numbers = #tpu.dot_dimension_numbers<[2], [2], [1], [1], [0, 0, 0, 1, 1, 1], [0], [0]>} : vector<2x8x8xf32>, vector<2x8x8xf32>, vector<2x8x8xf32> -> vector<2x8x8xf32>
    "tpu.trace_stop"() : () -> ()
    %33 = vector.extract_strided_slice %16 {offsets = [0, 16], sizes = [16, 8], strides = [1, 1]} : vector<16x32xf32> to vector<16x8xf32>
    %34 = vector.shape_cast %33 : vector<16x8xf32> to vector<2x8x8xf32>
    %35 = vector.extract_strided_slice %17 {offsets = [0, 16], sizes = [16, 8], strides = [1, 1]} : vector<16x32xf32> to vector<16x8xf32>
    %36 = vector.shape_cast %35 : vector<16x8xf32> to vector<2x8x8xf32>
    %37 = vector.extract_strided_slice %18 {offsets = [0, 16], sizes = [16, 8], strides = [1, 1]} : vector<16x32xf32> to vector<16x8xf32>
    %38 = vector.shape_cast %37 : vector<16x8xf32> to vector<2x8x8xf32>
    "tpu.trace_start"() <{level = 10 : i32, message = "bqd,bkd->bqk"}> : () -> ()
    %cst_15 = arith.constant dense<0.000000e+00> : vector<2x8x8xf32>
    %39 = tpu.matmul %34, %36, %cst_15 {dimension_numbers = #tpu.dot_dimension_numbers<[2], [2], [1], [1], [0, 0, 0, 1, 1, 1], [0], [0]>} : vector<2x8x8xf32>, vector<2x8x8xf32>, vector<2x8x8xf32> -> vector<2x8x8xf32>
    "tpu.trace_stop"() : () -> ()
    %40 = vector.extract_strided_slice %16 {offsets = [0, 24], sizes = [16, 8], strides = [1, 1]} : vector<16x32xf32> to vector<16x8xf32>
    %41 = vector.shape_cast %40 : vector<16x8xf32> to vector<2x8x8xf32>
    %42 = vector.extract_strided_slice %17 {offsets = [0, 24], sizes = [16, 8], strides = [1, 1]} : vector<16x32xf32> to vector<16x8xf32>
    %43 = vector.shape_cast %42 : vector<16x8xf32> to vector<2x8x8xf32>
    %44 = vector.extract_strided_slice %18 {offsets = [0, 24], sizes = [16, 8], strides = [1, 1]} : vector<16x32xf32> to vector<16x8xf32>
    %45 = vector.shape_cast %44 : vector<16x8xf32> to vector<2x8x8xf32>
    "tpu.trace_start"() <{level = 10 : i32, message = "bqd,bkd->bqk"}> : () -> ()
    %cst_16 = arith.constant dense<0.000000e+00> : vector<2x8x8xf32>
    %46 = tpu.matmul %41, %43, %cst_16 {dimension_numbers = #tpu.dot_dimension_numbers<[2], [2], [1], [1], [0, 0, 0, 1, 1, 1], [0], [0]>} : vector<2x8x8xf32>, vector<2x8x8xf32>, vector<2x8x8xf32> -> vector<2x8x8xf32>
    "tpu.trace_stop"() : () -> ()
    %47 = tpu.concatenate %25, %32, %39, %46 in 0 : vector<2x8x8xf32>, vector<2x8x8xf32>, vector<2x8x8xf32>, vector<2x8x8xf32> -> vector<8x8x8xf32>
    %48 = vector.broadcast %8 : vector<8x1x8xf32> to vector<8x8x8xf32>
    %49 = arith.addf %47, %48 : vector<8x8x8xf32>
    %cst_17 = arith.constant dense<0xFF800000> : vector<8x8xf32>
    %50 = vector.multi_reduction <maximumf>, %49, %cst_17 [2] : vector<8x8x8xf32> to vector<8x8xf32>
    %51 = vector.shape_cast %50 : vector<8x8xf32> to vector<8x8x1xf32>
    %52 = vector.broadcast %51 : vector<8x8x1xf32> to vector<8x8x8xf32>
    %53 = arith.subf %49, %52 : vector<8x8x8xf32>
    %54 = math.exp %53 : vector<8x8x8xf32>
    %cst_18 = arith.constant dense<0.000000e+00> : vector<8x8xf32>
    %55 = vector.multi_reduction <add>, %54, %cst_18 [2] : vector<8x8x8xf32> to vector<8x8xf32>
    %56 = vector.shape_cast %55 : vector<8x8xf32> to vector<8x8x1xf32>
    %57 = tpu.reciprocal %56 : vector<8x8x1xf32> -> vector<8x8x1xf32>
    %58 = vector.broadcast %57 : vector<8x8x1xf32> to vector<8x8x8xf32>
    %59 = arith.mulf %54, %58 : vector<8x8x8xf32>
    %60 = vector.shape_cast %59 : vector<8x8x8xf32> to vector<4x2x8x8xf32>
    %c0_19 = arith.constant 0 : index
    %c0_20 = arith.constant 0 : index
    %c0_21 = arith.constant 0 : index
    %c0_22 = arith.constant 0 : index
    %61 = vector.load %arg15[%c0_19, %c0_20, %c0_21, %c0_22] : memref<4x2x8x8xf32, #tpu.memory_space<vmem>>, vector<4x2x8x8xf32>
    tpu.vector_store %arg15[%c0_19, %c0_20, %c0_21, %c0_22], %60 {strides = array<i32>} : memref<4x2x8x8xf32, #tpu.memory_space<vmem>>, vector<4x2x8x8xf32>,
    %62 = vector.extract_strided_slice %59 {offsets = [0, 0, 0], sizes = [2, 8, 8], strides = [1, 1, 1]} : vector<8x8x8xf32> to vector<2x8x8xf32>
    "tpu.trace_start"() <{level = 10 : i32, message = "bqk,bkd->bqd"}> : () -> ()
    %cst_23 = arith.constant dense<0.000000e+00> : vector<2x8x8xf32>
    %63 = tpu.matmul %62, %24, %cst_23 {dimension_numbers = #tpu.dot_dimension_numbers<[2], [1], [1], [2], [0, 0, 0, 1, 1, 2], [0], [0]>} : vector<2x8x8xf32>, vector<2x8x8xf32>, vector<2x8x8xf32> -> vector<2x8x8xf32>
    "tpu.trace_stop"() : () -> ()
    %64 = vector.shape_cast %63 : vector<2x8x8xf32> to vector<16x8xf32>
    %65 = vector.extract_strided_slice %59 {offsets = [2, 0, 0], sizes = [2, 8, 8], strides = [1, 1, 1]} : vector<8x8x8xf32> to vector<2x8x8xf32>
    "tpu.trace_start"() <{level = 10 : i32, message = "bqk,bkd->bqd"}> : () -> ()
    %cst_24 = arith.constant dense<0.000000e+00> : vector<2x8x8xf32>
    %66 = tpu.matmul %65, %31, %cst_24 {dimension_numbers = #tpu.dot_dimension_numbers<[2], [1], [1], [2], [0, 0, 0, 1, 1, 2], [0], [0]>} : vector<2x8x8xf32>, vector<2x8x8xf32>, vector<2x8x8xf32> -> vector<2x8x8xf32>
    "tpu.trace_stop"() : () -> ()
    %67 = vector.shape_cast %66 : vector<2x8x8xf32> to vector<16x8xf32>
    %68 = vector.extract_strided_slice %59 {offsets = [4, 0, 0], sizes = [2, 8, 8], strides = [1, 1, 1]} : vector<8x8x8xf32> to vector<2x8x8xf32>
    "tpu.trace_start"() <{level = 10 : i32, message = "bqk,bkd->bqd"}> : () -> ()
    %cst_25 = arith.constant dense<0.000000e+00> : vector<2x8x8xf32>
    %69 = tpu.matmul %68, %38, %cst_25 {dimension_numbers = #tpu.dot_dimension_numbers<[2], [1], [1], [2], [0, 0, 0, 1, 1, 2], [0], [0]>} : vector<2x8x8xf32>, vector<2x8x8xf32>, vector<2x8x8xf32> -> vector<2x8x8xf32>
    "tpu.trace_stop"() : () -> ()
    %70 = vector.shape_cast %69 : vector<2x8x8xf32> to vector<16x8xf32>
    %71 = vector.extract_strided_slice %59 {offsets = [6, 0, 0], sizes = [2, 8, 8], strides = [1, 1, 1]} : vector<8x8x8xf32> to vector<2x8x8xf32>
    "tpu.trace_start"() <{level = 10 : i32, message = "bqk,bkd->bqd"}> : () -> ()
    %cst_26 = arith.constant dense<0.000000e+00> : vector<2x8x8xf32>
    %72 = tpu.matmul %71, %45, %cst_26 {dimension_numbers = #tpu.dot_dimension_numbers<[2], [1], [1], [2], [0, 0, 0, 1, 1, 2], [0], [0]>} : vector<2x8x8xf32>, vector<2x8x8xf32>, vector<2x8x8xf32> -> vector<2x8x8xf32>
    "tpu.trace_stop"() : () -> ()
    %73 = vector.shape_cast %72 : vector<2x8x8xf32> to vector<16x8xf32>
    %74 = tpu.concatenate %64, %67, %70, %73 in 1 : vector<16x8xf32>, vector<16x8xf32>, vector<16x8xf32>, vector<16x8xf32> -> vector<16x32xf32>
    %c0_27 = arith.constant 0 : index
    %c0_28 = arith.constant 0 : index
    %75 = vector.load %arg5[%c0_27, %c0_28] : memref<1x32xf32, #tpu.memory_space<vmem>>, vector<1x32xf32>
    %76 = vector.broadcast %75 : vector<1x32xf32> to vector<16x32xf32>
    %77 = arith.addf %1, %76 : vector<16x32xf32>
    %c0_29 = arith.constant 0 : index
    %c0_30 = arith.constant 0 : index
    %78 = vector.load %arg4[%c0_29, %c0_30] : memref<32x32xf32, #tpu.memory_space<vmem>>, vector<32x32xf32>
    %cst_31 = arith.constant dense<0.000000e+00> : vector<16x32xf32>
    %79 = tpu.matmul %74, %78, %cst_31 {dimension_numbers = #tpu.dot_dimension_numbers<[1], [0], [0], [1], [0, 0, 1, 1], [], []>} : vector<16x32xf32>, vector<32x32xf32>, vector<16x32xf32> -> vector<16x32xf32>
    %80 = arith.addf %77, %79 : vector<16x32xf32>
    %c0_32 = arith.constant 0 : index
    %c0_33 = arith.constant 0 : index
    %81 = vector.load %arg6[%c0_32, %c0_33] : memref<1x32xf32, #tpu.memory_space<vmem>>, vector<1x32xf32>
    %c0_34 = arith.constant 0 : index
    %c0_35 = arith.constant 0 : index
    %82 = vector.load %arg7[%c0_34, %c0_35] : memref<1x32xf32, #tpu.memory_space<vmem>>, vector<1x32xf32>
    %cst_36 = arith.constant dense<0.000000e+00> : vector<16xf32>
    %83 = vector.multi_reduction <add>, %80, %cst_36 [1] : vector<16x32xf32> to vector<16xf32>
    %84 = vector.shape_cast %83 : vector<16xf32> to vector<16x1xf32>
    %cst_37 = arith.constant 3.200000e+01 : f32
    %85 = vector.broadcast %cst_37 : f32 to vector<16x1xf32>
    %86 = arith.divf %84, %85 : vector<16x1xf32>
    %87 = vector.broadcast %86 : vector<16x1xf32> to vector<16x32xf32>
    %88 = arith.subf %80, %87 : vector<16x32xf32>
    %89 = arith.mulf %88, %88 : vector<16x32xf32>
    %cst_38 = arith.constant dense<0.000000e+00> : vector<16xf32>
    %90 = vector.multi_reduction <add>, %89, %cst_38 [1] : vector<16x32xf32> to vector<16xf32>
    %91 = vector.shape_cast %90 : vector<16xf32> to vector<16x1xf32>
    %cst_39 = arith.constant 3.200000e+01 : f32
    %92 = vector.broadcast %cst_39 : f32 to vector<16x1xf32>
    %93 = arith.divf %91, %92 : vector<16x1xf32>
    %94 = vector.broadcast %86 : vector<16x1xf32> to vector<16x32xf32>
    %95 = arith.subf %80, %94 : vector<16x32xf32>
    %cst_40 = arith.constant 9.99999974E-6 : f32
    %96 = vector.broadcast %cst_40 : f32 to vector<16x1xf32>
    %97 = arith.addf %93, %96 : vector<16x1xf32>
    %98 = math.rsqrt %97 : vector<16x1xf32>
    %99 = vector.broadcast %98 : vector<16x1xf32> to vector<16x32xf32>
    %100 = arith.mulf %95, %99 : vector<16x32xf32>
    %101 = vector.broadcast %81 : vector<1x32xf32> to vector<16x32xf32>
    %102 = arith.mulf %100, %101 : vector<16x32xf32>
    %103 = vector.broadcast %82 : vector<1x32xf32> to vector<16x32xf32>
    %104 = arith.addf %102, %103 : vector<16x32xf32>
    %c0_41 = arith.constant 0 : index
    %c0_42 = arith.constant 0 : index
    %105 = vector.load %arg8[%c0_41, %c0_42] : memref<32x64xf32, #tpu.memory_space<vmem>>, vector<32x64xf32>
    %cst_43 = arith.constant dense<0.000000e+00> : vector<16x64xf32>
    %106 = tpu.matmul %104, %105, %cst_43 {dimension_numbers = #tpu.dot_dimension_numbers<[1], [0], [0], [1], [0, 0, 1, 1], [], []>} : vector<16x32xf32>, vector<32x64xf32>, vector<16x64xf32> -> vector<16x64xf32>
    %c0_44 = arith.constant 0 : index
    %c0_45 = arith.constant 0 : index
    %107 = vector.load %arg9[%c0_44, %c0_45] : memref<1x64xf32, #tpu.memory_space<vmem>>, vector<1x64xf32>
    %108 = vector.broadcast %107 : vector<1x64xf32> to vector<16x64xf32>
    %109 = arith.addf %106, %108 : vector<16x64xf32>
    %cst_46 = arith.constant 0.000000e+00 : f32
    %110 = vector.broadcast %cst_46 : f32 to vector<16x64xf32>
    %111 = arith.maximumf %109, %110 : vector<16x64xf32>
    %c0_47 = arith.constant 0 : index
    %c0_48 = arith.constant 0 : index
    %112 = vector.load %arg10[%c0_47, %c0_48] : memref<64x32xf32, #tpu.memory_space<vmem>>, vector<64x32xf32>
    %cst_49 = arith.constant dense<0.000000e+00> : vector<16x32xf32>
    %113 = tpu.matmul %111, %112, %cst_49 {dimension_numbers = #tpu.dot_dimension_numbers<[1], [0], [0], [1], [0, 0, 1, 1], [], []>} : vector<16x64xf32>, vector<64x32xf32>, vector<16x32xf32> -> vector<16x32xf32>
    %c0_50 = arith.constant 0 : index
    %c0_51 = arith.constant 0 : index
    %114 = vector.load %arg11[%c0_50, %c0_51] : memref<1x32xf32, #tpu.memory_space<vmem>>, vector<1x32xf32>
    %115 = vector.broadcast %114 : vector<1x32xf32> to vector<16x32xf32>
    %116 = arith.addf %113, %115 : vector<16x32xf32>
    %117 = arith.addf %116, %104 : vector<16x32xf32>
    %c0_52 = arith.constant 0 : index
    %c0_53 = arith.constant 0 : index
    %118 = vector.load %arg12[%c0_52, %c0_53] : memref<1x32xf32, #tpu.memory_space<vmem>>, vector<1x32xf32>
    %c0_54 = arith.constant 0 : index
    %c0_55 = arith.constant 0 : index
    %119 = vector.load %arg13[%c0_54, %c0_55] : memref<1x32xf32, #tpu.memory_space<vmem>>, vector<1x32xf32>
    %cst_56 = arith.constant dense<0.000000e+00> : vector<16xf32>
    %120 = vector.multi_reduction <add>, %117, %cst_56 [1] : vector<16x32xf32> to vector<16xf32>
    %121 = vector.shape_cast %120 : vector<16xf32> to vector<16x1xf32>
    %cst_57 = arith.constant 3.200000e+01 : f32
    %122 = vector.broadcast %cst_57 : f32 to vector<16x1xf32>
    %123 = arith.divf %121, %122 : vector<16x1xf32>
    %124 = vector.broadcast %123 : vector<16x1xf32> to vector<16x32xf32>
    %125 = arith.subf %117, %124 : vector<16x32xf32>
    %126 = arith.mulf %125, %125 : vector<16x32xf32>
    %cst_58 = arith.constant dense<0.000000e+00> : vector<16xf32>
    %127 = vector.multi_reduction <add>, %126, %cst_58 [1] : vector<16x32xf32> to vector<16xf32>
    %128 = vector.shape_cast %127 : vector<16xf32> to vector<16x1xf32>
    %cst_59 = arith.constant 3.200000e+01 : f32
    %129 = vector.broadcast %cst_59 : f32 to vector<16x1xf32>
    %130 = arith.divf %128, %129 : vector<16x1xf32>
    %131 = vector.broadcast %123 : vector<16x1xf32> to vector<16x32xf32>
    %132 = arith.subf %117, %131 : vector<16x32xf32>
    %cst_60 = arith.constant 9.99999974E-6 : f32
    %133 = vector.broadcast %cst_60 : f32 to vector<16x1xf32>
    %134 = arith.addf %130, %133 : vector<16x1xf32>
    %135 = math.rsqrt %134 : vector<16x1xf32>
    %136 = vector.broadcast %135 : vector<16x1xf32> to vector<16x32xf32>
    %137 = arith.mulf %132, %136 : vector<16x32xf32>
    %138 = vector.broadcast %118 : vector<1x32xf32> to vector<16x32xf32>
    %139 = arith.mulf %137, %138 : vector<16x32xf32>
    %140 = vector.broadcast %119 : vector<1x32xf32> to vector<16x32xf32>
    %141 = arith.addf %139, %140 : vector<16x32xf32>
    %142 = vector.shape_cast %141 : vector<16x32xf32> to vector<2x8x32xf32>
    %c0_61 = arith.constant 0 : index
    %c0_62 = arith.constant 0 : index
    %c0_63 = arith.constant 0 : index
    %143 = vector.load %arg14[%c0_61, %c0_62, %c0_63] : memref<2x8x32xf32, #tpu.memory_space<vmem>>, vector<2x8x32xf32>
    tpu.vector_store %arg14[%c0_61, %c0_62, %c0_63], %142 {strides = array<i32>} : memref<2x8x32xf32, #tpu.memory_space<vmem>>, vector<2x8x32xf32>,
    return
  }
}

</mosaic_0001>

<bundles_post_ra>
// kernel: encoder_layer.1
= control target key start
LH: loop header
LB: loop body
LE: loop exit
PB: predicated region body
PF: predicated region fallthrough
CT: control target
= control target key end

     0   :  { %vm69_vm0 = vcmask 261120   ;;  %s2679_s0 = inlined_call_operand.vmem [shape: f32[2,8,32], index: 0, kind: input, shape index: {}]   ;;  %s2680_s1 = inlined_call_operand.vmem [shape: f32[2,1,8], index: 1, kind: input, shape index: {}]   ;;  %s2681_s2 = inlined_call_operand.vmem [shape: f32[32,96], index: 2, kind: input, shape index: {}]   ;;  %s2682_s3 = inlined_call_operand.vmem [shape: f32[1,96], index: 3, kind: input, shape index: {}]   ;;  %s2683_s4 = inlined_call_operand.vmem [shape: f32[32,32], index: 4, kind: input, shape index: {}]   ;;  %s2684_s5 = inlined_call_operand.vmem [shape: f32[1,32], index: 5, kind: input, shape index: {}]   ;;  %s2685_s6 = inlined_call_operand.vmem [shape: f32[1,32], index: 6, kind: input, shape index: {}]   ;;  %s2686_s7 = inlined_call_operand.vmem [shape: f32[1,32], index: 7, kind: input, shape index: {}]   ;;  %s2687_s8 = inlined_call_operand.vmem [shape: f32[32,64], index: 8, kind: input, shape index: {}]   ;;  %s2688_s9 = inlined_call_operand.vmem [shape: f32[1,64], index: 9, kind: input, shape index: {}]   ;;  %s2689_s10 = inlined_call_operand.vmem [shape: f32[64,32], index: 10, kind: input, shape index: {}]   ;;  %s2690_s11 = inlined_call_operand.vmem [shape: f32[1,32], index: 11, kind: input, shape index: {}]   ;;  %s2691_s12 = inlined_call_operand.vmem [shape: f32[1,32], index: 12, kind: input, shape index: {}]   ;;  %s2692_s13 = inlined_call_operand.vmem [shape: f32[1,32], index: 13, kind: input, shape index: {}]   ;;  %s2693_s14 = inlined_call_operand.hbm [shape: f32[2,8,32], index: 14, kind: output, shape index: {0}]   ;;  %s2694_s15 = inlined_call_operand.vmem [shape: f32[4,2,8,8], index: 15, kind: output, shape index: {1}]  }
   0x1   :  { %v58_v0 = vld [vmem:[%s2681_s2] sm:$0xff]  ;;  %v59_v1 = vld [vmem:[%s2681_s2 + $0x8] sm:$0xff]  ;;  %v60_v2 = vld [vmem:[%s2681_s2 + $0x10] sm:$0xff] }
   0x2   :  { %v2166_v3 = vpack.c.bf16 %v59_v1, %v58_v0  ;;  %v61_v4 = vld [vmem:[%s2681_s2 + $0x18] sm:$0xff]  ;;  %v2401_v5 = vld [vmem:[%s2679_s0] sm:$0xff] }
   0x3   :  { %v2170_v6 = vpack.c.bf16 %v61_v4, %v60_v2  ;;  %2042 = vmatprep.mubr.msk.f32.mxu1 %vm69_vm0, %v2401_v5 }
   0x4   :  { %21 = vsyncpa [#allocation3], 0  ;;  %2167 = vmatprep.subr.bf16.mxu1 %v2166_v3  ;;  %v2408_v7 = vld [vmem:[%s2679_s0 + $0x8] sm:$0xff]  ;;  %v2288_v8 = vmov 0.0   ;;  %vm2289_vm1 = vmmov 0   ;;  %s2290_s0 = smov 88   ;;  %v780_v30 = vlaneseq }
   0x5   :  { %2169 = vmatpush3.bf16.msra.mxu1 %v2166_v3  ;;  %2055 = vmatprep.subr.mxu0 %v2288_v8  ;;  %v1934_v9 = vld [vmem:[%s2682_s3] ss:$0 sm:$0xff]  ;;  %s2291_s16 = smov 96   ;;  %s2292_s17 = smov 80   ;;  %vm156_vm2 = vcmask 64512   ;;  %vm1528_vm5 = vcmask 130048  }
   0x6   :  { %2171 = vmatprep.subr.bf16.mxu1 %v2170_v6  ;;  %2057 = vmatprep.mubr.msk.f32.mxu0 %vm2289_vm1, %v2288_v8  ;;  %s2293_s18 = smov 72   ;;  %s2294_s3 = smov 120   ;;  %v52_v31 = vld [vmem:[%s2680_s1] sm:$0x1]  ;;  %v781_v32 = vshrl.u32 %v780_v30, 7  ;;  %vm1531_vm6 = vcmask 195584  }
   0x7   :  { %s2295_s19 = smov 112   ;;  %s2296_s20 = smov 104   ;;  %vm54_vm3 = vcmp.eq.f32.partialorder %v52_v31, 0.0  ;;  %v53_v33 = vld [vmem:[%s2680_s1 + $0x1] sm:$0x1]  ;;  %vm1784_vm7 = vcmask 523264  }
   0x8   :  { %v782_v34 = vsub.s32 0, %v781_v32  ;;  %v56_v35 = vsel %vm54_vm3, -1e+09, %v2288_v8  ;;  %vm55_vm4 = vcmp.eq.f32.partialorder %v53_v33, 0.0  ;;  %s2297_s1 = smov 64   ;;  %s2298_s25 = smov 56  }
   0x9   :  { %2173 = vmatpush3.bf16.msra.mxu1 %v2170_v6  ;;  %v57_v37 = vsel %vm55_vm4, -1e+09, %v2288_v8  ;;  %s2299_s26 = smov 48   ;;  %s2300_s27 = smov 40  }
   0xa   :  { %2045 = vmatprep.subr.mxu1 %v2288_v8  ;;  %v783_v36 = vrot.slane %v56_v35, %v782_v34  ;;  %v787_v41 = vrot.slane %v57_v37, %v782_v34 }
   0xc   :  { %2043 = vmatmul.mubr.msk.f32.vlgmr.msra.gmra.mrb[0].mxu1 %vm69_vm0, %v2408_v7 }
   0xd   :  { %2047 = vmatprep.mubr.msk.f32.mxu1 %vm2289_vm1, %v2288_v8 }
  0xdf   :  { %v2044_v10 = vpop.f32.mrb[0].mxu1 }
  0xe0   :  { %v2421_v11 = vadd.f32 %v2044_v10, %v1934_v9  ;;  %v142_v12 = vpop.f32.mrb[1].mxu1 }
  0xe1   :  { %v2425_v13 = vadd.f32 %v1934_v9, %v142_v12 }
  0xe2   :  { %390 = vrot.lane.b32.xlu1 %v2421_v11, %s2290_s0  ;;  %233 = vrot.lane.b32.xlu0 %v2421_v11, %s2291_s16  ;;  %v152_v14 = vmul.f32 0.35355338, %v2421_v11 }
  0xe3   :  { %v151_v15 = vmul.f32 0.35355338, %v2425_v13 }
  0xe6   :  { %546 = vrot.lane.b32.xlu1 %v2421_v11, %s2292_s17  ;;  %154 = vrot.lane.b32.xlu0 %v2425_v13, %s2291_s16  ;;  %s2302_s16 = smov 16  }
  0xea   :  { %702 = vrot.lane.b32.xlu1 %v2421_v11, %s2293_s18  ;;  %468 = vrot.lane.b32.xlu0 %v2425_v13, %s2292_s17  ;;  %s2303_s17 = smov 24  }
  0xee   :  { %312 = vrot.lane.b32.xlu1 %v2425_v13, %s2290_s0  ;;  %624 = vrot.lane.b32.xlu0 %v2425_v13, %s2293_s18  ;;  %s2301_s0 = smov 8  }
  0xf2   :  { %388 = vrot.lane.b32.xlu1 %v152_v14, %s2294_s3  ;;  %310 = vrot.lane.b32.xlu0 %v151_v15, %s2294_s3 }
  0xf6   :  { %544 = vrot.lane.b32.xlu1 %v152_v14, %s2295_s19  ;;  %466 = vrot.lane.b32.xlu0 %v151_v15, %s2295_s19 }
  0xfa   :  { %700 = vrot.lane.b32.xlu1 %v152_v14, %s2296_s20  ;;  %622 = vrot.lane.b32.xlu0 %v151_v15, %s2296_s20 }
 0x154   :  { %v391_v16 = vpop.permute.xlu1 %390  ;;  %v234_v17 = vpop.permute.xlu0 %233 }
 0x158   :  { %v547_v18 = vpop.permute.xlu1 %546  ;;  %v155_v19 = vpop.permute.xlu0 %154 }
 0x159   :  { %2046 = vmatpush3.xpose.msk.msra.mxu1 %vm156_vm2, %v155_v19 }
 0x15a   :  { %2050 = vmatprep.subr.mxu1 %v2288_v8 }
 0x15c   :  { %v703_v20 = vpop.permute.xlu1 %702  ;;  %v469_v21 = vpop.permute.xlu0 %468  ;;  %2048 = vmatmul.mubr.msk.f32.vlgmr.msra.gmra.mrb[2].mxu1 %vm156_vm2, %v151_v15 }
 0x15d   :  { %2051 = vmatpush3.xpose.msk.msra.mxu1 %vm156_vm2, %v234_v17  ;;  %2052 = vmatprep.mubr.msk.f32.mxu1 %vm2289_vm1, %v2288_v8 }
 0x15e   :  { %2060 = vmatprep.subr.mxu1 %v2288_v8 }
 0x160   :  { %v313_v22 = vpop.permute.xlu1 %312  ;;  %v625_v23 = vpop.permute.xlu0 %624  ;;  %2053 = vmatmul.mubr.msk.f32.vlgmr.msra.gmra.mrb[4].mxu1 %vm156_vm2, %v152_v14 }
 0x161   :  { %2056 = vmatpush3.xpose.msk.msra.mxu0 %vm156_vm2, %v313_v22  ;;  %2061 = vmatpush3.xpose.msk.msra.mxu1 %vm156_vm2, %v391_v16 }
 0x162   :  { %2065 = vmatprep.subr.mxu0 %v2288_v8  ;;  %2062 = vmatprep.mubr.msk.f32.mxu1 %vm2289_vm1, %v2288_v8 }
 0x163   :  { %2070 = vmatprep.subr.mxu1 %v2288_v8 }
 0x164   :  { %v389_v24 = vpop.permute.xlu1 %388  ;;  %v311_v25 = vpop.permute.xlu0 %310 }
 0x165   :  { %2058 = vmatmul.mubr.msk.f32.vlgmr.msra.gmra.mrb[0].mxu0 %vm156_vm2, %v311_v25  ;;  %2063 = vmatmul.mubr.msk.f32.vlgmr.msra.gmra.mrb[6].mxu1 %vm156_vm2, %v389_v24 }
 0x166   :  { %2066 = vmatpush3.xpose.msk.msra.mxu0 %vm156_vm2, %v469_v21  ;;  %2071 = vmatpush3.xpose.msk.msra.mxu1 %vm156_vm2, %v547_v18 }
 0x167   :  { %2067 = vmatprep.mubr.msk.f32.mxu0 %vm2289_vm1, %v2288_v8  ;;  %2075 = vmatprep.subr.mxu0 %v2288_v8 }
 0x168   :  { %v545_v26 = vpop.permute.xlu1 %544  ;;  %v467_v27 = vpop.permute.xlu0 %466  ;;  %2072 = vmatprep.mubr.msk.f32.mxu1 %vm2289_vm1, %v2288_v8  ;;  %2080 = vmatprep.subr.mxu1 %v2288_v8 }
 0x169   :  { %2068 = vmatmul.mubr.msk.f32.vlgmr.msra.gmra.mrb[2].mxu0 %vm156_vm2, %v467_v27  ;;  %2073 = vmatmul.mubr.msk.f32.vlgmr.msra.gmra.mrb[8].mxu1 %vm156_vm2, %v545_v26 }
 0x16a   :  { %2076 = vmatpush3.xpose.msk.msra.mxu0 %vm156_vm2, %v625_v23  ;;  %2081 = vmatpush3.xpose.msk.msra.mxu1 %vm156_vm2, %v703_v20 }
 0x16b   :  { %2077 = vmatprep.mubr.msk.f32.mxu0 %vm2289_vm1, %v2288_v8  ;;  %2082 = vmatprep.mubr.msk.f32.mxu1 %vm2289_vm1, %v2288_v8 }
 0x16c   :  { %v701_v28 = vpop.permute.xlu1 %700  ;;  %v623_v29 = vpop.permute.xlu0 %622  ;;  %2085 = vmatprep.subr.mxu0 %v2288_v8  ;;  %2090 = vmatprep.subr.mxu1 %v2288_v8 }
 0x16d   :  { %2078 = vmatmul.mubr.msk.f32.vlgmr.msra.gmra.mrb[4].mxu0 %vm156_vm2, %v623_v29  ;;  %2083 = vmatmul.mubr.msk.f32.vlgmr.msra.gmra.mrb[10].mxu1 %vm156_vm2, %v701_v28 }
 0x16e   :  { %2087 = vmatprep.mubr.msk.f32.mxu0 %vm2289_vm1, %v2288_v8  ;;  %2092 = vmatprep.mubr.msk.f32.mxu1 %vm2289_vm1, %v2288_v8 }
 0x22f   :  { %v228_v38 = vpop.f32.mrb[2].mxu1 }
 0x230   :  { %v790_v39 = vadd.f32 %v783_v36, %v228_v38  ;;  %v2049_v40 = vpop.f32.mrb[3].mxu1 }
 0x232   :  { %v798_v42 = vsel %vm156_vm2, %v790_v39, -inf }
 0x233   :  { %799 = vmax.xlane.f32.xlu0 %v798_v42  ;;  %v306_v43 = vpop.f32.mrb[4].mxu1 }
 0x234   :  { %v791_v44 = vadd.f32 %v787_v41, %v306_v43  ;;  %v2054_v45 = vpop.f32.mrb[5].mxu1 }
 0x236   :  { %v801_v46 = vsel %vm156_vm2, %v791_v44, -inf }
 0x237   :  { %802 = vmax.xlane.f32.xlu1 %v801_v46 }
 0x238   :  { %v384_v47 = vpop.f32.mrb[0].mxu0  ;;  %v462_v48 = vpop.f32.mrb[6].mxu1 }
 0x239   :  { %v792_v49 = vadd.f32 %v783_v36, %v384_v47  ;;  %v2059_v50 = vpop.f32.mrb[1].mxu0  ;;  %v2064_v51 = vpop.f32.mrb[7].mxu1  ;;  %v793_v52 = vadd.f32 %v787_v41, %v462_v48 }
 0x23b   :  { %v804_v53 = vsel %vm156_vm2, %v792_v49, -inf  ;;  %v807_v61 = vsel %vm156_vm2, %v793_v52, -inf }
 0x23c   :  { %v540_v54 = vpop.f32.mrb[2].mxu0  ;;  %805 = vmax.xlane.f32.xlu0 %v804_v53  ;;  %v618_v55 = vpop.f32.mrb[8].mxu1 }
 0x23d   :  { %v794_v56 = vadd.f32 %v783_v36, %v540_v54  ;;  %v2069_v57 = vpop.f32.mrb[3].mxu0  ;;  %v2074_v58 = vpop.f32.mrb[9].mxu1  ;;  %v795_v59 = vadd.f32 %v787_v41, %v618_v55 }
 0x23f   :  { %v810_v60 = vsel %vm156_vm2, %v794_v56, -inf  ;;  %v813_v6 = vsel %vm156_vm2, %v795_v59, -inf }
 0x240   :  { %v696_v62 = vpop.f32.mrb[4].mxu0  ;;  %811 = vmax.xlane.f32.xlu1 %v810_v60  ;;  %808 = vmax.xlane.f32.xlu0 %v807_v61  ;;  %v774_v63 = vpop.f32.mrb[10].mxu1 }
 0x241   :  { %v796_v0 = vadd.f32 %v783_v36, %v696_v62  ;;  %v2079_v1 = vpop.f32.mrb[5].mxu0  ;;  %v2084_v2 = vpop.f32.mrb[11].mxu1  ;;  %v797_v3 = vadd.f32 %v787_v41, %v774_v63 }
 0x243   :  { %v816_v4 = vsel %vm156_vm2, %v796_v0, -inf  ;;  %v819_v9 = vsel %vm156_vm2, %v797_v3, -inf }
 0x244   :  { %817 = vmax.xlane.f32.xlu1 %v816_v4  ;;  %814 = vmax.xlane.f32.xlu0 %v813_v6 }
 0x248   :  { %820 = vmax.xlane.f32.xlu0 %v819_v9 }
 0x255   :  { %894 = vrot.lane.b32.xlu1 %v2425_v13, %s2297_s1 }
 0x259   :  { %1046 = vrot.lane.b32.xlu1 %v2425_v13, %s2298_s25 }
 0x25d   :  { %1122 = vrot.lane.b32.xlu1 %v2421_v11, %s2298_s25  ;;  %s2304_s25 = smov [#allocation2]  }
 0x25e   :  { %970 = vrot.lane.b32.xlu0 %v2421_v11, %s2297_s1 }
 0x261   :  { %1274 = vrot.lane.b32.xlu1 %v2421_v11, %s2299_s26 }
 0x262   :  { %1198 = vrot.lane.b32.xlu0 %v2425_v13, %s2299_s26  ;;  %s1919_s26 = sshll.u32 %s2304_s25, 4  ;;  %s1920_s26 = int_to_ptr.vmem [resolvable:$true] %s1919_s26 }
 0x263   :  { %p2269_p1 = scmp.lt.s32.totalorder %s1920_s26, %s1920_s26 }
 0x2c0   :  { %v800_v10 = vpop.xlane.xlu0 %799 }
 0x2c1   :  { %v822_v12 = vsub.f32 %v790_v39, %v800_v10 }
 0x2c3   :  { %v830_v14 = vmul.f32 1.442695, %v822_v12 }
 0x2c4   :  { %v803_v15 = vpop.xlane.xlu1 %802 }
 0x2c5   :  { %2224 = vpow2.f32 %v830_v14  ;;  %v823_v16 = vsub.f32 %v791_v44, %v803_v15 }
 0x2c7   :  { %v832_v17 = vmul.f32 1.442695, %v823_v16 }
 0x2c9   :  { %2226 = vpow2.f32 %v832_v17  ;;  %v806_v18 = vpop.xlane.xlu0 %805 }
 0x2ca   :  { %v824_v19 = vsub.f32 %v792_v49, %v806_v18 }
 0x2cc   :  { %v834_v20 = vmul.f32 1.442695, %v824_v19 }
 0x2cd   :  { %v812_v21 = vpop.xlane.xlu1 %811  ;;  %v809_v22 = vpop.xlane.xlu0 %808 }
 0x2ce   :  { %2228 = vpow2.f32 %v834_v20  ;;  %v826_v23 = vsub.f32 %v794_v56, %v812_v21  ;;  %v825_v24 = vsub.f32 %v793_v52, %v809_v22 }
 0x2cf   :  { %v2225_v25 = vpop.eup %2224 }
 0x2d0   :  { %v838_v26 = vmul.f32 1.442695, %v826_v23  ;;  %v836_v27 = vmul.f32 1.442695, %v825_v24  ;;  %v846_v28 = vsel %vm156_vm2, %v2225_v25, 0.0 }
 0x2d1   :  { %847 = vadd.xlane.f32.xlu1 %v846_v28  ;;  %v818_v29 = vpop.xlane.xlu1 %817  ;;  %v815_v30 = vpop.xlane.xlu0 %814 }
 0x2d2   :  { %2230 = vpow2.f32 %v838_v26  ;;  %v828_v31 = vsub.f32 %v796_v0, %v818_v29  ;;  %v827_v32 = vsub.f32 %v795_v59, %v815_v30  ;;  %v1544_v26 = vld [vmem:[%s2683_s4 + $0x8] sm:$0xff]  ;;  %v1545_v29 = vld [vmem:[%s2683_s4 + $0x10] sm:$0xff]  ;;  %v1546_v30 = vld [vmem:[%s2683_s4 + $0x18] sm:$0xff] }
 0x2d3   :  { %v2227_v33 = vpop.eup %2226  ;;  %2232 = vpow2.f32 %v836_v27 }
 0x2d4   :  { %v842_v34 = vmul.f32 1.442695, %v828_v31  ;;  %v840_v35 = vmul.f32 1.442695, %v827_v32  ;;  %v849_v36 = vsel %vm156_vm2, %v2227_v33, 0.0  ;;  %v2178_v31 = vpack.c.bf16 %v1546_v30, %v1545_v29 }
 0x2d5   :  { %v895_v37 = vpop.permute.xlu1 %894  ;;  %850 = vadd.xlane.f32.xlu0 %v849_v36  ;;  %v821_v38 = vpop.xlane.xlu0 %820 }
 0x2d6   :  { %2234 = vpow2.f32 %v842_v34  ;;  %v829_v39 = vsub.f32 %v797_v3, %v821_v38  ;;  %2086 = vmatpush3.msra.mxu0 %v895_v37 }
 0x2d7   :  { %2236 = vpow2.f32 %v840_v35  ;;  %2095 = vmatprep.subr.mxu0 %v2288_v8 }
 0x2d8   :  { %v2229_v40 = vpop.eup %2228  ;;  %v844_v41 = vmul.f32 1.442695, %v829_v39 }
 0x2d9   :  { %v971_v42 = vpop.permute.xlu0 %970  ;;  %v852_v43 = vsel %vm156_vm2, %v2229_v40, 0.0  ;;  %v1047_v54 = vpop.permute.xlu1 %1046 }
 0x2da   :  { %2238 = vpow2.f32 %v844_v41  ;;  %853 = vadd.xlane.f32.xlu1 %v852_v43  ;;  %2091 = vmatpush3.msra.mxu1 %v971_v42 }
 0x2db   :  { %2100 = vmatprep.subr.mxu1 %v2288_v8 }
 0x2dc   :  { %v2231_v44 = vpop.eup %2230 }
 0x2dd   :  { %v2233_v45 = vpop.eup %2232  ;;  %v858_v46 = vsel %vm156_vm2, %v2231_v44, 0.0  ;;  %v1123_v55 = vpop.permute.xlu1 %1122 }
 0x2de   :  { %859 = vadd.xlane.f32.xlu1 %v858_v46  ;;  %v855_v47 = vsel %vm156_vm2, %v2233_v45, 0.0  ;;  %v1199_v57 = vpop.permute.xlu0 %1198 }
 0x2df   :  { %856 = vadd.xlane.f32.xlu0 %v855_v47 }
 0x2e0   :  { %v2504_v48 = vpop.eup %2234 }
 0x2e1   :  { %v2506_v49 = vpop.eup %2236  ;;  %v864_v50 = vsel %vm156_vm2, %v2504_v48, 0.0  ;;  %v1275_v56 = vpop.permute.xlu1 %1274 }
 0x2e2   :  { %865 = vadd.xlane.f32.xlu1 %v864_v50  ;;  %v861_v51 = vsel %vm156_vm2, %v2506_v49, 0.0 }
 0x2e3   :  { %862 = vadd.xlane.f32.xlu0 %v861_v51 }
 0x2e4   :  { %v2512_v52 = vpop.eup %2238 }
 0x2e5   :  { %v867_v53 = vsel %vm156_vm2, %v2512_v52, 0.0 }
 0x2e7   :  { %868 = vadd.xlane.f32.xlu0 %v867_v53 }
 0x2f3   :  { %1426 = vrot.lane.b32.xlu1 %v2421_v11, %s2300_s27 }
 0x2fd   :  { %1350 = vrot.lane.b32.xlu0 %v2425_v13, %s2300_s27  ;;  %s2264_s27 = scalar_lea.vmem %s1920_s26, 256 }
 0x2fe   :  { %p2265_p0 = scmp.ne.s32.totalorder %s1920_s26, %s2264_s27  ;;  %p2270_p2 = scmp.lt.s32.totalorder %s2264_s27, %s2264_s27 }
 0x300   :  { %p2271_p3 = por %p2270_p2, %p2269_p1 }
 0x302   :  { %p2272_p4 = pnand %p2271_p3, %p2265_p0 }
 0x35e   :  { %v848_v58 = vpop.xlane.xlu1 %847 }
 0x35f   :  { %2240 = vrcp.f32 %v848_v58 }
 0x362   :  { %v851_v59 = vpop.xlane.xlu0 %850 }
 0x363   :  { %2242 = vrcp.f32 %v851_v59 }
 0x367   :  { %v854_v60 = vpop.xlane.xlu1 %853 }
 0x368   :  { %2244 = vrcp.f32 %v854_v60 }
 0x369   :  { %v2241_v61 = vpop.eup %2240 }
 0x36a   :  { %v878_v62 = vmul.f32 %v2241_v61, %v2225_v25  ;;  %v1543_v25 = vld [vmem:[%s2683_s4] sm:$0xff] }
 0x36b   :  { %v860_v63 = vpop.xlane.xlu1 %859 }
 0x36c   :  { %886 = vst.msk [vmem:[%s2694_s15] sm:$0xff] %vm156_vm2, %v878_v62  ;;  %2246 = vrcp.f32 %v860_v63  ;;  %v857_v11 = vpop.xlane.xlu0 %856  ;;  %2088 = vmatmul.mubr.msk.f32.vlgmr.msra.gmra.mrb[6].mxu0 %vm156_vm2, %v878_v62 }
 0x36d   :  { %v2243_v13 = vpop.eup %2242  ;;  %2248 = vrcp.f32 %v857_v11  ;;  %2096 = vmatpush3.msra.mxu0 %v1047_v54  ;;  %2097 = vmatprep.mubr.msk.f32.mxu0 %vm2289_vm1, %v2288_v8 }
 0x36e   :  { %v879_v0 = vmul.f32 %v2243_v13, %v2227_v33  ;;  %2105 = vmatprep.subr.mxu0 %v2288_v8 }
 0x36f   :  { %v866_v1 = vpop.xlane.xlu1 %865 }
 0x370   :  { %887 = vst.msk [vmem:[%s2694_s15 + $0x8] sm:$0xff] %vm156_vm2, %v879_v0  ;;  %2250 = vrcp.f32 %v866_v1  ;;  %v863_v2 = vpop.xlane.xlu0 %862  ;;  %2093 = vmatmul.mubr.msk.f32.vlgmr.msra.gmra.mrb[12].mxu1 %vm156_vm2, %v879_v0 }
 0x371   :  { %2252 = vrcp.f32 %v863_v2  ;;  %2101 = vmatpush3.msra.mxu1 %v1123_v55  ;;  %2102 = vmatprep.mubr.msk.f32.mxu1 %vm2289_vm1, %v2288_v8 }
 0x372   :  { %v2245_v3 = vpop.eup %2244  ;;  %2110 = vmatprep.subr.mxu1 %v2288_v8 }
 0x373   :  { %v880_v4 = vmul.f32 %v2245_v3, %v2229_v40  ;;  %v1427_v20 = vpop.permute.xlu1 %1426 }
 0x374   :  { %v869_v6 = vpop.xlane.xlu0 %868 }
 0x375   :  { %888 = vst.msk [vmem:[%s2694_s15 + $0x10] sm:$0xff] %vm156_vm2, %v880_v4  ;;  %2254 = vrcp.f32 %v869_v6  ;;  %2098 = vmatmul.mubr.msk.f32.vlgmr.msra.gmra.mrb[8].mxu0 %vm156_vm2, %v880_v4 }
 0x376   :  { %v2247_v9 = vpop.eup %2246  ;;  %2106 = vmatpush3.msra.mxu0 %v1199_v57  ;;  %2107 = vmatprep.mubr.msk.f32.mxu0 %vm2289_vm1, %v2288_v8 }
 0x377   :  { %v2249_v10 = vpop.eup %2248  ;;  %v882_v12 = vmul.f32 %v2247_v9, %v2231_v44  ;;  %2115 = vmatprep.subr.mxu0 %v2288_v8 }
 0x378   :  { %v881_v14 = vmul.f32 %v2249_v10, %v2233_v45  ;;  %v1351_v15 = vpop.permute.xlu0 %1350  ;;  %v1675_v10 = vld [vmem:[%s2687_s8] sm:$0xff] }
 0x379   :  { %890 = vst.msk [vmem:[%s2694_s15 + $0x20] sm:$0xff] %vm156_vm2, %v882_v12  ;;  %2108 = vmatmul.mubr.msk.f32.vlgmr.msra.gmra.mrb[10].mxu0 %vm156_vm2, %v882_v12  ;;  %v1676_v12 = vld [vmem:[%s2687_s8 + $0x8] sm:$0xff] }
 0x37a   :  { %v2251_v16 = vpop.eup %2250  ;;  %889 = vst.msk [vmem:[%s2694_s15 + $0x18] sm:$0xff] %vm156_vm2, %v881_v14  ;;  %2103 = vmatmul.mubr.msk.f32.vlgmr.msra.gmra.mrb[14].mxu1 %vm156_vm2, %v881_v14  ;;  %2116 = vmatpush3.msra.mxu0 %v1351_v15  ;;  %v2182_v14 = vpack.c.bf16 %v1676_v12, %v1675_v10  ;;  %v1677_v15 = vld [vmem:[%s2687_s8 + $0x10] sm:$0xff] }
 0x37b   :  { %v2253_v17 = vpop.eup %2252  ;;  %v884_v18 = vmul.f32 %v2251_v16, %v2504_v48  ;;  %2111 = vmatpush3.msra.mxu1 %v1275_v56  ;;  %2112 = vmatprep.mubr.msk.f32.mxu1 %vm2289_vm1, %v2288_v8  ;;  %v1961_v56 = vld [vmem:[%s2684_s5] ss:$0 sm:$0xff]  ;;  %v1678_v16 = vld [vmem:[%s2687_s8 + $0x18] sm:$0xff] }
 0x37c   :  { %v883_v19 = vmul.f32 %v2253_v17, %v2506_v49  ;;  %2117 = vmatprep.mubr.msk.f32.mxu0 %vm2289_vm1, %v2288_v8  ;;  %2120 = vmatprep.subr.mxu1 %v2288_v8  ;;  %v1542_v57 = vadd.f32 %v1961_v56, %v2408_v7  ;;  %v1541_v58 = vadd.f32 %v1961_v56, %v2401_v5 }
 0x37d   :  { %892 = vst.msk [vmem:[%s2694_s15 + $0x30] sm:$0xff] %vm156_vm2, %v884_v18  ;;  %2118 = vmatmul.mubr.msk.f32.vlgmr.msra.gmra.mrb[12].mxu0 %vm156_vm2, %v884_v18  ;;  %v2186_v17 = vpack.c.bf16 %v1678_v16, %v1677_v15  ;;  %v1769_v18 = vld [vmem:[%s2689_s10] sm:$0xff] }
 0x37e   :  { %891 = vst.msk [vmem:[%s2694_s15 + $0x28] sm:$0xff] %vm156_vm2, %v883_v19  ;;  %2113 = vmatmul.mubr.msk.f32.vlgmr.msra.gmra.mrb[16].mxu1 %vm156_vm2, %v883_v19  ;;  %v1770_v19 = vld [vmem:[%s2689_s10 + $0x8] sm:$0xff]  ;;  %v1972_v15 = vld [vmem:[%s2691_s12] ss:$0 sm:$0xff] }
 0x37f   :  { %v2255_v21 = vpop.eup %2254  ;;  %2121 = vmatpush3.msra.mxu1 %v1427_v20  ;;  %2122 = vmatprep.mubr.msk.f32.mxu1 %vm2289_vm1, %v2288_v8  ;;  %v2174_v8 = vpack.c.bf16 %v1544_v26, %v1543_v25  ;;  %v1771_v20 = vld [vmem:[%s2689_s10 + $0x10] sm:$0xff]  ;;  %v1774_v25 = vld [vmem:[%s2689_s10 + $0x28] sm:$0xff] }
 0x380   :  { %v885_v22 = vmul.f32 %v2255_v21, %v2512_v52  ;;  %2183 = vmatprep.subr.bf16.mxu1 %v2182_v14  ;;  %v2190_v21 = vpack.c.bf16 %v1770_v19, %v1769_v18  ;;  %v1973_v19 = vld [vmem:[%s2692_s13] ss:$0 sm:$0xff] }
 0x381   :  { %2175 = vmatprep.subr.bf16.mxu0 %v2174_v8 }
 0x382   :  { %893 = vst.msk [vmem:[%s2694_s15 + $0x38] sm:$0xff] %vm156_vm2, %v885_v22  ;;  %2123 = vmatmul.mubr.msk.f32.vlgmr.msra.gmra.mrb[18].mxu1 %vm156_vm2, %v885_v22  ;;  %2177 = vmatpush3.bf16.msra.mxu0 %v2174_v8  ;;  %v1772_v22 = vld [vmem:[%s2689_s10 + $0x18] sm:$0xff] }
 0x383   :  { %2179 = vmatprep.subr.bf16.mxu0 %v2178_v31  ;;  %2185 = vmatpush3.bf16.msra.mxu1 %v2182_v14 }
 0x384   :  { %2187 = vmatprep.subr.bf16.mxu1 %v2186_v17 }
 0x386   :  { %2181 = vmatpush3.bf16.msra.mxu0 %v2178_v31 }
 0x387   :  { %2189 = vmatpush3.bf16.msra.mxu1 %v2186_v17  ;;  %2191 = vmatprep.subr.bf16.mxu0 %v2190_v21 }
 0x43f   :  { %v966_v23 = vpop.f32.mrb[6].mxu0 }
 0x440   :  { %v2089_v24 = vpop.f32.mrb[7].mxu0 }
 0x441   :  { %v1773_v24 = vld [vmem:[%s2689_s10 + $0x20] sm:$0xff] }
 0x442   :  { %v2198_v26 = vpack.c.bf16 %v1774_v25, %v1773_v24 }
 0x443   :  { %v1042_v27 = vpop.f32.mrb[12].mxu1 }
 0x444   :  { %v2094_v28 = vpop.f32.mrb[13].mxu1 }
 0x448   :  { %v1118_v32 = vpop.f32.mrb[8].mxu0 }
 0x449   :  { %v2099_v33 = vpop.f32.mrb[9].mxu0  ;;  %1504 = vrot.lane.b32.xlu0 %v1118_v32, %s2301_s0 }
 0x44a   :  { %v1964_v33 = vld [vmem:[%s2685_s6] ss:$0 sm:$0xff] }
 0x44c   :  { %v1270_v34 = vpop.f32.mrb[10].mxu0 }
 0x44d   :  { %v1194_v35 = vpop.f32.mrb[14].mxu1  ;;  %1512 = vrot.lane.b32.xlu0 %v1270_v34, %s2302_s16  ;;  %v2109_v36 = vpop.f32.mrb[11].mxu0 }
 0x44e   :  { %1506 = vrot.lane.b32.xlu1 %v1194_v35, %s2301_s0  ;;  %v2104_v37 = vpop.f32.mrb[15].mxu1  ;;  %v1965_v35 = vld [vmem:[%s2686_s7] ss:$0 sm:$0xff] }
 0x450   :  { %v1422_v38 = vpop.f32.mrb[12].mxu0 }
 0x451   :  { %v1346_v39 = vpop.f32.mrb[16].mxu1  ;;  %1520 = vrot.lane.b32.xlu0 %v1422_v38, %s2303_s17  ;;  %v2119_v40 = vpop.f32.mrb[13].mxu0 }
 0x452   :  { %1514 = vrot.lane.b32.xlu1 %v1346_v39, %s2302_s16  ;;  %v2114_v41 = vpop.f32.mrb[17].mxu1 }
 0x455   :  { %v1498_v42 = vpop.f32.mrb[18].mxu1 }
 0x456   :  { %1522 = vrot.lane.b32.xlu1 %v1498_v42, %s2303_s17  ;;  %v2124_v43 = vpop.f32.mrb[19].mxu1  ;;  %v1775_v42 = vld [vmem:[%s2689_s10 + $0x30] sm:$0xff] }
 0x457   :  { %v1776_v43 = vld [vmem:[%s2689_s10 + $0x38] sm:$0xff] }
 0x4bb   :  { %v1505_v44 = vpop.permute.xlu0 %1504 }
 0x4bc   :  { %v1526_v47 = vsel %vm156_vm2, %v966_v23, %v1505_v44  ;;  %v2194_v23 = vpack.c.bf16 %v1772_v22, %v1771_v20  ;;  %v2202_v44 = vpack.c.bf16 %v1776_v43, %v1775_v42 }
 0x4bf   :  { %v1513_v45 = vpop.permute.xlu0 %1512 }
 0x4c0   :  { %v1507_v46 = vpop.permute.xlu1 %1506  ;;  %v1529_v48 = vsel %vm1528_vm5, %v1526_v47, %v1513_v45  ;;  %v1966_v45 = vld [vmem:[%s2688_s9] ss:$0 sm:$0xff] }
 0x4c1   :  { %v1527_v52 = vsel %vm156_vm2, %v1042_v27, %v1507_v46 }
 0x4c3   :  { %v1521_v49 = vpop.permute.xlu0 %1520 }
 0x4c4   :  { %v1532_v50 = vsel %vm1531_vm6, %v1529_v48, %v1521_v49  ;;  %v1515_v51 = vpop.permute.xlu1 %1514 }
 0x4c5   :  { %2133 = vmatprep.mubr.msk.f32.mxu0 %vm69_vm0, %v1532_v50  ;;  %v1530_v53 = vsel %vm1528_vm5, %v1527_v52, %v1515_v51  ;;  %v1969_v52 = vld [vmem:[%s2690_s11] ss:$0 sm:$0xff] }
 0x4c8   :  { %v1523_v54 = vpop.permute.xlu1 %1522 }
 0x4c9   :  { %v1533_v55 = vsel %vm1531_vm6, %v1530_v53, %v1523_v54 }
 0x4ca   :  { %2134 = vmatmul.mubr.msk.f32.vlgmr.msra.gmra.mrb[14].mxu0 %vm69_vm0, %v1533_v55 }
 0x4cb   :  { %2193 = vmatpush3.bf16.msra.mxu0 %v2190_v21 }
 0x4cc   :  { %2195 = vmatprep.subr.bf16.mxu0 %v2194_v23 }
 0x4cf   :  { %2197 = vmatpush3.bf16.msra.mxu0 %v2194_v23 }
 0x4d0   :  { %2199 = vmatprep.subr.bf16.mxu0 %v2198_v26 }
 0x4d3   :  { %2201 = vmatpush3.bf16.msra.mxu0 %v2198_v26 }
 0x4d4   :  { %2203 = vmatprep.subr.bf16.mxu0 %v2202_v44 }
 0x4d7   :  { %2205 = vmatpush3.bf16.msra.mxu0 %v2202_v44 }
 0x59d   :  { %v2135_v59 = vpop.f32.mrb[14].mxu0 }
 0x59e   :  { %v1629_v60 = vadd.f32 %v2135_v59, %v1542_v57  ;;  %v1619_v61 = vpop.f32.mrb[15].mxu0 }
 0x59f   :  { %v1628_v62 = vadd.f32 %v1619_v61, %v1541_v58 }
 0x5a0   :  { %v1635_v63 = vsel %vm69_vm0, %v1629_v60, 0.0 }
 0x5a1   :  { %1636 = vadd.xlane.f32.xlu1 %v1635_v63  ;;  %v1632_v11 = vsel %vm69_vm0, %v1628_v62, 0.0 }
 0x5a2   :  { %1633 = vadd.xlane.f32.xlu0 %v1632_v11 }
 0x62e   :  { %v1637_v13 = vpop.xlane.xlu1 %1636 }
 0x62f   :  { %v1640_v0 = vmul.f32 0.03125, %v1637_v13  ;;  %v1634_v1 = vpop.xlane.xlu0 %1633 }
 0x630   :  { %v1639_v2 = vmul.f32 0.03125, %v1634_v1 }
 0x631   :  { %v1642_v3 = vsub.f32 %v1629_v60, %v1640_v0 }
 0x632   :  { %v1641_v4 = vsub.f32 %v1628_v62, %v1639_v2 }
 0x633   :  { %v1644_v5 = vmul.f32 %v1642_v3, %v1642_v3 }
 0x634   :  { %v1643_v6 = vmul.f32 %v1641_v4, %v1641_v4 }
 0x635   :  { %v1648_v9 = vsel %vm69_vm0, %v1644_v5, 0.0 }
 0x636   :  { %v1645_v7 = vsel %vm69_vm0, %v1643_v6, 0.0 }
 0x637   :  { %1646 = vadd.xlane.f32.xlu0 %v1645_v7 }
 0x63b   :  { %1649 = vadd.xlane.f32.xlu0 %v1648_v9 }
 0x6c4   :  { %v1647_v8 = vpop.xlane.xlu0 %1646 }
 0x6c5   :  { %v1651_v27 = vmul.f32 0.03125, %v1647_v8 }
 0x6c7   :  { %v1653_v28 = vadd.f32 1e-05, %v1651_v27 }
 0x6c8   :  { %v1650_v29 = vpop.xlane.xlu0 %1649 }
 0x6c9   :  { %2256 = vrsqrt.f32 %v1653_v28  ;;  %v1652_v30 = vmul.f32 0.03125, %v1650_v29 }
 0x6cb   :  { %v1654_v31 = vadd.f32 1e-05, %v1652_v30 }
 0x6cd   :  { %2258 = vrsqrt.f32 %v1654_v31 }
 0x6d3   :  { %v2257_v32 = vpop.eup %2256 }
 0x6d4   :  { %v1657_v34 = vmul.f32 %v2257_v32, %v1641_v4 }
 0x6d6   :  { %v1665_v36 = vmul.f32 %v1964_v33, %v1657_v34 }
 0x6d7   :  { %v2259_v37 = vpop.eup %2258 }
 0x6d8   :  { %v1658_v38 = vmul.f32 %v2259_v37, %v1642_v3  ;;  %v1673_v39 = vadd.f32 %v1965_v35, %v1665_v36 }
 0x6da   :  { %v1666_v40 = vmul.f32 %v1964_v33, %v1658_v38  ;;  %2144 = vmatprep.mubr.msk.f32.mxu1 %vm69_vm0, %v1673_v39 }
 0x6dc   :  { %v1674_v41 = vadd.f32 %v1965_v35, %v1666_v40 }
 0x6de   :  { %2145 = vmatmul.mubr.msk.f32.vlgmr.msra.gmra.mrb[20].mxu1 %vm69_vm0, %v1674_v41 }
 0x7b1   :  { %v2146_v46 = vpop.f32.mrb[20].mxu1 }
 0x7b2   :  { %v1764_v47 = vadd.f32 %v2146_v46, %v1966_v45  ;;  %v1758_v48 = vpop.f32.mrb[21].mxu1 }
 0x7b3   :  { %v1759_v49 = vadd.f32 %v1966_v45, %v1758_v48 }
 0x7b4   :  { %v1768_v51 = vmax.f32 %v1764_v47, 0.0 }
 0x7b5   :  { %v1767_v50 = vmax.f32 %v1759_v49, 0.0 }
 0x7b7   :  { %2163 = vmatprep.mubr.msk.f32.mxu0 %vm1784_vm7, %v1767_v50 }
 0x7b8   :  { %2164 = vmatmul.mubr.msk.f32.vlgmr.msra.gmra.mrb[16].mxu0 %vm1784_vm7, %v1768_v51 }
 0x88b   :  { %v2165_v53 = vpop.f32.mrb[16].mxu0 }
 0x88c   :  { %v1863_v54 = vadd.f32 %v2165_v53, %v1969_v52  ;;  %v1857_v55 = vpop.f32.mrb[17].mxu0 }
 0x88d   :  { %v1858_v56 = vadd.f32 %v1969_v52, %v1857_v55 }
 0x88e   :  { %v1867_v57 = vadd.f32 %v1863_v54, %v1674_v41 }
 0x88f   :  { %v1866_v58 = vadd.f32 %v1858_v56, %v1673_v39 }
 0x890   :  { %v1873_v59 = vsel %vm69_vm0, %v1867_v57, 0.0 }
 0x891   :  { %1874 = vadd.xlane.f32.xlu0 %v1873_v59  ;;  %v1870_v60 = vsel %vm69_vm0, %v1866_v58, 0.0 }
 0x892   :  { %1871 = vadd.xlane.f32.xlu1 %v1870_v60 }
 0x91e   :  { %v1875_v61 = vpop.xlane.xlu0 %1874 }
 0x91f   :  { %v1877_v62 = vmul.f32 0.03125, %v1875_v61  ;;  %v1872_v63 = vpop.xlane.xlu1 %1871 }
 0x920   :  { %v1876_v11 = vmul.f32 0.03125, %v1872_v63 }
 0x921   :  { %v1879_v13 = vsub.f32 %v1867_v57, %v1877_v62 }
 0x922   :  { %v1878_v0 = vsub.f32 %v1866_v58, %v1876_v11 }
 0x923   :  { %v1881_v1 = vmul.f32 %v1879_v13, %v1879_v13 }
 0x924   :  { %v1880_v2 = vmul.f32 %v1878_v0, %v1878_v0 }
 0x925   :  { %v1885_v3 = vsel %vm69_vm0, %v1881_v1, 0.0 }
 0x926   :  { %1886 = vadd.xlane.f32.xlu0 %v1885_v3  ;;  %v1882_v4 = vsel %vm69_vm0, %v1880_v2, 0.0 }
 0x927   :  { %1883 = vadd.xlane.f32.xlu1 %v1882_v4 }
 0x9b3   :  { %v1887_v6 = vpop.xlane.xlu0 %1886 }
 0x9b4   :  { %v1889_v7 = vmul.f32 0.03125, %v1887_v6  ;;  %v1884_v5 = vpop.xlane.xlu1 %1883 }
 0x9b5   :  { %v1888_v9 = vmul.f32 0.03125, %v1884_v5 }
 0x9b6   :  { %v1891_v10 = vadd.f32 1e-05, %v1889_v7 }
 0x9b7   :  { %v1890_v12 = vadd.f32 1e-05, %v1888_v9 }
 0x9b8   :  { %2260 = vrsqrt.f32 %v1891_v10 }
 0x9b9   :  { %2262 = vrsqrt.f32 %v1890_v12 }
 0x9c2   :  { %v2261_v14 = vpop.eup %2260 }
 0x9c3   :  { %v2263_v16 = vpop.eup %2262  ;;  %v1895_v17 = vmul.f32 %v2261_v14, %v1879_v13 }
 0x9c4   :  { %v1894_v18 = vmul.f32 %v2263_v16, %v1878_v0 }
 0x9c5   :  { %v1903_v20 = vmul.f32 %v1972_v15, %v1895_v17 }
 0x9c6   :  { %v1902_v21 = vmul.f32 %v1972_v15, %v1894_v18 }
 0x9c7   :  { %v1911_v22 = vadd.f32 %v1973_v19, %v1903_v20 }
 0x9c8   :  { %v1910_v23 = vadd.f32 %v1973_v19, %v1902_v21 }
 0x9c9   :  { %1913 = vst.msk [vmem:[#allocation2 + $0x8] sm:$0xff] %vm69_vm0, %v1911_v22 }
 0x9ca   :  { %1912 = vst.msk [vmem:[#allocation2] sm:$0xff] %vm69_vm0, %v1910_v23 }
 0x9cb   :  { %2275 = shalt.err (!%p2272_p4)
}
 0x9cc   :  { %s2276_s28 = scalar_lea.hbm %s2693_s14, 256 }
 0x9cd   :  { %p2277_p5 = scmp.ne.s32.totalorder %s2693_s14, %s2276_s28  ;;  %p2280_p6 = scmp.lt.u32.totalorder %s2276_s28, %s2693_s14 }
 0x9cf   :  { %p2282_p7 = pnand %p2280_p6, %p2277_p5 }
 0x9d1   :  { %2285 = shalt.err (!%p2282_p7)
}
 0x9d2   :  { %s2305_s30 = smov 128  }
 0x9d3   :  { %1925 = dma.vmem_to_hbm [thread:$0]  %s1920_s26, 256, %s2693_s14, [#allocation3], %s2305_s30, %s2305_s30, %s2301_s0  }
 0x9d4   :  { %2286 = dma.done.wait [#allocation3], 256  }
 0x9d5   :  { %2287 = vsyncadd [#allocation3], 4294967040 }
 0x9d6   :  { %1933 = vsyncpa [#allocation3], 1 }

</bundles_post_ra>
